<compile_context>
chip_gen: v6e
topology: v6e:2x2x1
jax: 0.10.0
libtpu: 0.0.40
codegen_flags: <defaults>
</compile_context>

<pallas_src>
import functools

import jax
import jax.numpy as jnp
from jax import lax
from jax.experimental import pallas as pl
from jax.experimental.pallas import tpu as pltpu


def _round_up(x, m):
    return (x + m - 1) // m * m


def dam_position_kernel(gamma_ref,
                        xq_ref, xkv_ref,
                        wq_ref, bq_ref, wk_ref, bk_ref, wv_ref, bv_ref,
                        o_ref,
                        q_s, k_cache, v_cache, m_s, l_s, acc_s,
                        *, hw, tkv, mask_needed):
    qi = pl.program_id(1)
    ki = pl.program_id(2)
    nkv = pl.num_programs(2)

    # ---- K / V projection: exactly once per (batch, kv tile), during qi == 0.
    @pl.when(qi == 0)
    def _():
        xkv = xkv_ref[0].astype(jnp.bfloat16)                       # (tkv, C_pad)
        k = jnp.dot(xkv, wk_ref[...],
                    preferred_element_type=jnp.float32) + bk_ref[...]
        v = jnp.dot(xkv, wv_ref[...],
                    preferred_element_type=jnp.float32) + bv_ref[...]
        k_cache[ki] = k.astype(jnp.bfloat16)
        v_cache[ki] = v.astype(jnp.bfloat16)

    # ---- Q projection + flash-state init: once per (batch, q tile).
    @pl.when(ki == 0)
    def _():
        xq = xq_ref[0].astype(jnp.bfloat16)                         # (tq, C_pad)
        q = jnp.dot(xq, wq_ref[...],
                    preferred_element_type=jnp.float32) + bq_ref[...]
        q_s[...] = q.astype(jnp.bfloat16)
        m_s[...] = jnp.full_like(m_s, -jnp.inf)
        l_s[...] = jnp.zeros_like(l_s)
        acc_s[...] = jnp.zeros_like(acc_s)

    q = q_s[...]                                                    # (tq, Cq_pad) bf16
    k = k_cache[ki]                                                 # (tkv, Cq_pad) bf16
    v = v_cache[ki]                                                 # (tkv, C_pad) bf16

    # energy[i, j] = q_i . k_j  -- contraction on dim 1 of both operands, so no
    # transposed copy of k is materialized before the MXU.
    s = lax.dot_general(q, k, dimension_numbers=(((1,), (1,)), ((), ())),
                        preferred_element_type=jnp.float32)          # (tq, tkv)
    if mask_needed:
        col = ki * tkv + lax.broadcasted_iota(jnp.int32, s.shape, 1)
        s = jnp.where(col < hw, s, -1e30)                           # mask padded keys

    # Online softmax update (all f32; matches torch softmax over j).
    m_prev = m_s[...]
    m_new = jnp.maximum(m_prev, jnp.max(s, axis=-1, keepdims=True))
    alpha = jnp.exp(m_prev - m_new)
    p = jnp.exp(s - m_new)
    l_s[...] = alpha * l_s[...] + jnp.sum(p, axis=-1, keepdims=True)
    acc_s[...] = alpha * acc_s[...] + jnp.dot(p.astype(jnp.bfloat16), v,
                                              preferred_element_type=jnp.float32)
    m_s[...] = m_new

    # ---- Finalize: normalize, scale by gamma, add the residual, store.
    @pl.when(ki == nkv - 1)
    def _():
        inv_l = pl.reciprocal(l_s[...], approx=True)
        o_ref[0] = gamma_ref[0] * (acc_s[...] * inv_l) + xq_ref[0]


@functools.partial(jax.jit, static_argnames=("tile",))
def dam_position(x_nchw, wq, bq, wk, bk, wv, bv, gamma, *, tile=256):
    """x_nchw: (N, C, H, W) f32.  wq/wk: (C, C//8), wv: (C, C), biases (1, .),
    gamma: (1, 1).  tile = q/kv tile length (256 fits the v7x VMEM budget)."""
    N, C, H, W = x_nchw.shape
    HW = H * W
    Cq = wq.shape[1]

    C_pad = _round_up(C, 128)                 # lane-dense channels / output store
    Cq_pad = _round_up(Cq, 128)               # fix the tiny QK^T contraction dim
    t = min(_round_up(tile, 8), _round_up(HW, 8))
    HW_pad = _round_up(HW, t)
    n_tiles = HW_pad // t

    # NCHW -> (N, HW, C), zero-pad pixels and channels.
    x = jnp.transpose(x_nchw.reshape(N, C, HW), (0, 2, 1))
    x = jnp.pad(x, ((0, 0), (0, HW_pad - HW), (0, C_pad - C)))

    def pad2(a, rows, cols):
        return jnp.pad(a, ((0, rows - a.shape[0]), (0, cols - a.shape[1])))

    wq_p = pad2(wq, C_pad, Cq_pad).astype(jnp.bfloat16)
    wk_p = pad2(wk, C_pad, Cq_pad).astype(jnp.bfloat16)
    wv_p = pad2(wv, C_pad, C_pad).astype(jnp.bfloat16)
    bq_p = pad2(bq, 1, Cq_pad).astype(jnp.float32)
    bk_p = pad2(bk, 1, Cq_pad).astype(jnp.float32)
    bv_p = pad2(bv, 1, C_pad).astype(jnp.float32)
    gamma_s = jnp.asarray(gamma, jnp.float32).reshape(1)

    kernel = functools.partial(dam_position_kernel, hw=HW, tkv=t,
                               mask_needed=(HW_pad != HW))

    out = pl.pallas_call(
        kernel,
        out_shape=jax.ShapeDtypeStruct((N, HW_pad, C_pad), jnp.float32),
        grid_spec=pltpu.PrefetchScalarGridSpec(
            num_scalar_prefetch=0,
            grid=(N, n_tiles, n_tiles),
            in_specs=[
                # gamma: scalar in SMEM (no per-step VMEM tile).
                pl.BlockSpec(memory_space=pltpu.MemorySpace.SMEM),
                # x, q side: one block per (batch, q tile); constant over ki.
                pl.BlockSpec((1, t, C_pad), lambda b, qi, ki: (b, qi, 0)),
                # x, kv side: streamed only during the qi == 0 cache-fill sweep,
                # then parked on the last block so it is not re-fetched from HBM.
                pl.BlockSpec((1, t, C_pad),
                             lambda b, qi, ki: (b, jnp.where(qi == 0, ki,
                                                             n_tiles - 1), 0)),
                pl.BlockSpec((C_pad, Cq_pad), lambda b, qi, ki: (0, 0)),   # wq
                pl.BlockSpec((1, Cq_pad), lambda b, qi, ki: (0, 0)),       # bq
                pl.BlockSpec((C_pad, Cq_pad), lambda b, qi, ki: (0, 0)),   # wk
                pl.BlockSpec((1, Cq_pad), lambda b, qi, ki: (0, 0)),       # bk
                pl.BlockSpec((C_pad, C_pad), lambda b, qi, ki: (0, 0)),    # wv
                pl.BlockSpec((1, C_pad), lambda b, qi, ki: (0, 0)),        # bv
            ],
            out_specs=pl.BlockSpec((1, t, C_pad), lambda b, qi, ki: (b, qi, 0)),
            scratch_shapes=[
                pltpu.VMEM((t, Cq_pad), jnp.bfloat16),             # q tile
                pltpu.VMEM((n_tiles, t, Cq_pad), jnp.bfloat16),    # K cache (full)
                pltpu.VMEM((n_tiles, t, C_pad), jnp.bfloat16),     # V cache (full)
                pltpu.VMEM((t, 1), jnp.float32),                   # running max
                pltpu.VMEM((t, 1), jnp.float32),                   # running sum
                pltpu.VMEM((t, C_pad), jnp.float32),               # accumulator
            ],
        ),
        compiler_params=pltpu.CompilerParams(
            # batch is core-parallel; q and kv must stay sequential so the
            # K/V cache fill (qi == 0 sweep) precedes its reuse.
            dimension_semantics=("parallel", "arbitrary", "arbitrary")),
    )(gamma_s, x, x, wq_p, bq_p, wk_p, bk_p, wv_p, bv_p)

    out = out[:, :HW, :C]                                          # crop padding
    return jnp.transpose(out, (0, 2, 1)).reshape(N, C, H, W)


def dam_position_ref(x_nchw, wq, bq, wk, bk, wv, bv, gamma):
    """Pure-JAX reference mirroring the PyTorch forward exactly (f32)."""
    N, C, H, W = x_nchw.shape
    HW = H * W
    x = jnp.transpose(x_nchw.reshape(N, C, HW), (0, 2, 1))          # (N, HW, C)
    q = jnp.einsum('npc,cd->npd', x, wq) + bq
    k = jnp.einsum('npc,cd->npd', x, wk) + bk
    v = jnp.einsum('npc,cd->npd', x, wv) + bv
    energy = jnp.einsum('nid,njd->nij', q, k)
    attn = jax.nn.softmax(energy, axis=-1)
    out = jnp.einsum('nij,njc->nic', attn, v)
    out = gamma[0, 0] * out + x
    return jnp.transpose(out, (0, 2, 1)).reshape(N, C, H, W)


if __name__ == "__main__":
    C = 32
    Cq = C // 8

    key = jax.random.PRNGKey(0)
    kp, kx1, kx2 = jax.random.split(key, 3)
    kwq, kbq, kwk, kbk, kwv, kbv = jax.random.split(kp, 6)

    wq = 0.1 * jax.random.normal(kwq, (C, Cq), dtype=jnp.float32)
    bq = 0.1 * jax.random.normal(kbq, (1, Cq), dtype=jnp.float32)
    wk = 0.1 * jax.random.normal(kwk, (C, Cq), dtype=jnp.float32)
    bk = 0.1 * jax.random.normal(kbk, (1, Cq), dtype=jnp.float32)
    wv = 0.1 * jax.random.normal(kwv, (C, C), dtype=jnp.float32)
    bv = 0.1 * jax.random.normal(kbv, (1, C), dtype=jnp.float32)
    # nn.Parameter(torch.zeros(1)) would give gamma == 0 (output == x); use a
    # nonzero value so the attention path is actually exercised.
    gamma = jnp.full((1, 1), 0.5, dtype=jnp.float32)
    params = (wq, bq, wk, bk, wv, bv, gamma)

    # Config A: HW divides evenly into tiles -> multi q/kv tile flash path.
    x1 = jax.random.normal(kx1, (2, C, 8, 8), dtype=jnp.float32)
    out1 = dam_position(x1, *params, tile=32)
    jax.block_until_ready(out1)
    ref1 = dam_position_ref(x1, *params)
    assert out1.shape == x1.shape
    err1 = float(jnp.max(jnp.abs(out1 - ref1)))
    assert jnp.allclose(out1, ref1, atol=3e-2, rtol=3e-2), err1

    # Config B: ragged spatial size -> exercises HW padding + key masking.
    x2 = jax.random.normal(kx2, (2, C, 7, 7), dtype=jnp.float32)
    out2 = dam_position(x2, *params, tile=16)
    jax.block_until_ready(out2)
    ref2 = dam_position_ref(x2, *params)
    assert out2.shape == x2.shape
    err2 = float(jnp.max(jnp.abs(out2 - ref2)))
    assert jnp.allclose(out2, ref2, atol=3e-2, rtol=3e-2), err2

    print("KERNEL_OK")
</pallas_src>

<mosaic_0001>
module attributes {stable_mosaic.version = 11 : i64} {
  func.func @dam_position_kernel(%arg0: i32, %arg1: i32, %arg2: i32, %arg3: memref<1xf32, #tpu.memory_space<smem>>, %arg4: memref<1x32x128xf32, #tpu.memory_space<vmem>>, %arg5: memref<1x32x128xf32, #tpu.memory_space<vmem>>, %arg6: memref<128x128xbf16, #tpu.memory_space<vmem>>, %arg7: memref<1x128xf32, #tpu.memory_space<vmem>>, %arg8: memref<128x128xbf16, #tpu.memory_space<vmem>>, %arg9: memref<1x128xf32, #tpu.memory_space<vmem>>, %arg10: memref<128x128xbf16, #tpu.memory_space<vmem>>, %arg11: memref<1x128xf32, #tpu.memory_space<vmem>>, %arg12: memref<1x32x128xf32, #tpu.memory_space<vmem>>, %arg13: memref<32x128xbf16, #tpu.memory_space<vmem>>, %arg14: memref<2x32x128xbf16, #tpu.memory_space<vmem>>, %arg15: memref<2x32x128xbf16, #tpu.memory_space<vmem>>, %arg16: memref<32x1xf32, #tpu.memory_space<vmem>>, %arg17: memref<32x1xf32, #tpu.memory_space<vmem>>, %arg18: memref<32x128xf32, #tpu.memory_space<vmem>>) attributes {dimension_semantics = [#tpu.dimension_semantics<parallel>, #tpu.dimension_semantics<arbitrary>, #tpu.dimension_semantics<arbitrary>], iteration_bounds = array<i64: 2, 2, 2>, scalar_prefetch = 0 : i64, scratch_operands = 6 : i64, tpu.core_type = #tpu.core_type<tc>, window_params = [{transform_indices = @transform_0, window_bounds = array<i64: 1>}, {transform_indices = @transform_1, window_bounds = array<i64: 1, 32, 128>}, {transform_indices = @transform_2, window_bounds = array<i64: 1, 32, 128>}, {pipeline_mode = #tpu.pipeline_mode<synchronous>, transform_indices = @transform_3, window_bounds = array<i64: 128, 128>}, {pipeline_mode = #tpu.pipeline_mode<synchronous>, transform_indices = @transform_4, window_bounds = array<i64: 1, 128>}, {pipeline_mode = #tpu.pipeline_mode<synchronous>, transform_indices = @transform_5, window_bounds = array<i64: 128, 128>}, {pipeline_mode = #tpu.pipeline_mode<synchronous>, transform_indices = @transform_6, window_bounds = array<i64: 1, 128>}, {pipeline_mode = #tpu.pipeline_mode<synchronous>, transform_indices = @transform_7, window_bounds = array<i64: 128, 128>}, {pipeline_mode = #tpu.pipeline_mode<synchronous>, transform_indices = @transform_8, window_bounds = array<i64: 1, 128>}, {transform_indices = @transform_9, window_bounds = array<i64: 1, 32, 128>}]} {
    %c0_i32 = arith.constant 0 : i32
    %0 = arith.cmpi eq, %arg1, %c0_i32 : i32
    %1 = arith.extui %0 : i1 to i32
    %c0_i32_0 = arith.constant 0 : i32
    %2 = arith.cmpi ne, %1, %c0_i32_0 : i32
    scf.if %2 {
      %c0_24 = arith.constant 0 : index
      %c0_25 = arith.constant 0 : index
      %c0_26 = arith.constant 0 : index
      %40 = vector.load %arg5[%c0_24, %c0_25, %c0_26] : memref<1x32x128xf32, #tpu.memory_space<vmem>>, vector<1x32x128xf32>
      %41 = vector.shape_cast %40 : vector<1x32x128xf32> to vector<32x128xf32>
      %42 = arith.truncf %41 : vector<32x128xf32> to vector<32x128xbf16>
      %c0_27 = arith.constant 0 : index
      %c0_28 = arith.constant 0 : index
      %43 = vector.load %arg8[%c0_27, %c0_28] : memref<128x128xbf16, #tpu.memory_space<vmem>>, vector<128x128xbf16>
      %cst_29 = arith.constant dense<0.000000e+00> : vector<32x128xf32>
      %44 = tpu.matmul %42, %43, %cst_29 {dimension_numbers = #tpu.dot_dimension_numbers<[1], [0], [0], [1], [0, 0, 1, 1], [], []>} : vector<32x128xbf16>, vector<128x128xbf16>, vector<32x128xf32> -> vector<32x128xf32>
      %c0_30 = arith.constant 0 : index
      %c0_31 = arith.constant 0 : index
      %45 = vector.load %arg9[%c0_30, %c0_31] : memref<1x128xf32, #tpu.memory_space<vmem>>, vector<1x128xf32>
      %46 = vector.broadcast %45 : vector<1x128xf32> to vector<32x128xf32>
      %47 = arith.addf %44, %46 : vector<32x128xf32>
      %c0_32 = arith.constant 0 : index
      %c0_33 = arith.constant 0 : index
      %48 = vector.load %arg10[%c0_32, %c0_33] : memref<128x128xbf16, #tpu.memory_space<vmem>>, vector<128x128xbf16>
      %cst_34 = arith.constant dense<0.000000e+00> : vector<32x128xf32>
      %49 = tpu.matmul %42, %48, %cst_34 {dimension_numbers = #tpu.dot_dimension_numbers<[1], [0], [0], [1], [0, 0, 1, 1], [], []>} : vector<32x128xbf16>, vector<128x128xbf16>, vector<32x128xf32> -> vector<32x128xf32>
      %c0_35 = arith.constant 0 : index
      %c0_36 = arith.constant 0 : index
      %50 = vector.load %arg11[%c0_35, %c0_36] : memref<1x128xf32, #tpu.memory_space<vmem>>, vector<1x128xf32>
      %51 = vector.broadcast %50 : vector<1x128xf32> to vector<32x128xf32>
      %52 = arith.addf %49, %51 : vector<32x128xf32>
      %53 = arith.truncf %47 : vector<32x128xf32> to vector<32x128xbf16>
      %54 = arith.index_cast %arg2 : i32 to index
      %c0_37 = arith.constant 0 : index
      %c0_38 = arith.constant 0 : index
      %55 = vector.load %arg14[%54, %c0_37, %c0_38] : memref<2x32x128xbf16, #tpu.memory_space<vmem>>, vector<1x32x128xbf16>
      %56 = vector.shape_cast %55 : vector<1x32x128xbf16> to vector<32x128xbf16>
      %57 = vector.shape_cast %53 : vector<32x128xbf16> to vector<1x32x128xbf16>
      tpu.vector_store %arg14[%54, %c0_37, %c0_38], %57 {strides = array<i32>} : memref<2x32x128xbf16, #tpu.memory_space<vmem>>, vector<1x32x128xbf16>,
      %58 = arith.truncf %52 : vector<32x128xf32> to vector<32x128xbf16>
      %59 = arith.index_cast %arg2 : i32 to index
      %c0_39 = arith.constant 0 : index
      %c0_40 = arith.constant 0 : index
      %60 = vector.load %arg15[%59, %c0_39, %c0_40] : memref<2x32x128xbf16, #tpu.memory_space<vmem>>, vector<1x32x128xbf16>
      %61 = vector.shape_cast %60 : vector<1x32x128xbf16> to vector<32x128xbf16>
      %62 = vector.shape_cast %58 : vector<32x128xbf16> to vector<1x32x128xbf16>
      tpu.vector_store %arg15[%59, %c0_39, %c0_40], %62 {strides = array<i32>} : memref<2x32x128xbf16, #tpu.memory_space<vmem>>, vector<1x32x128xbf16>,
    } else {
    }
    %c0_i32_1 = arith.constant 0 : i32
    %3 = arith.cmpi eq, %arg2, %c0_i32_1 : i32
    %4 = arith.extui %3 : i1 to i32
    %c0_i32_2 = arith.constant 0 : i32
    %5 = arith.cmpi ne, %4, %c0_i32_2 : i32
    scf.if %5 {
      %c0_24 = arith.constant 0 : index
      %c0_25 = arith.constant 0 : index
      %c0_26 = arith.constant 0 : index
      %40 = vector.load %arg4[%c0_24, %c0_25, %c0_26] : memref<1x32x128xf32, #tpu.memory_space<vmem>>, vector<1x32x128xf32>
      %41 = vector.shape_cast %40 : vector<1x32x128xf32> to vector<32x128xf32>
      %42 = arith.truncf %41 : vector<32x128xf32> to vector<32x128xbf16>
      %c0_27 = arith.constant 0 : index
      %c0_28 = arith.constant 0 : index
      %43 = vector.load %arg6[%c0_27, %c0_28] : memref<128x128xbf16, #tpu.memory_space<vmem>>, vector<128x128xbf16>
      %cst_29 = arith.constant dense<0.000000e+00> : vector<32x128xf32>
      %44 = tpu.matmul %42, %43, %cst_29 {dimension_numbers = #tpu.dot_dimension_numbers<[1], [0], [0], [1], [0, 0, 1, 1], [], []>} : vector<32x128xbf16>, vector<128x128xbf16>, vector<32x128xf32> -> vector<32x128xf32>
      %c0_30 = arith.constant 0 : index
      %c0_31 = arith.constant 0 : index
      %45 = vector.load %arg7[%c0_30, %c0_31] : memref<1x128xf32, #tpu.memory_space<vmem>>, vector<1x128xf32>
      %46 = vector.broadcast %45 : vector<1x128xf32> to vector<32x128xf32>
      %47 = arith.addf %44, %46 : vector<32x128xf32>
      %48 = arith.truncf %47 : vector<32x128xf32> to vector<32x128xbf16>
      %c0_32 = arith.constant 0 : index
      %c0_33 = arith.constant 0 : index
      %49 = vector.load %arg13[%c0_32, %c0_33] : memref<32x128xbf16, #tpu.memory_space<vmem>>, vector<32x128xbf16>
      tpu.vector_store %arg13[%c0_32, %c0_33], %48 {strides = array<i32>} : memref<32x128xbf16, #tpu.memory_space<vmem>>, vector<32x128xbf16>,
      %cst_34 = arith.constant 0xFF800000 : f32
      %50 = vector.broadcast %cst_34 : f32 to vector<32x1xf32>
      %c0_35 = arith.constant 0 : index
      %c0_36 = arith.constant 0 : index
      %51 = vector.load %arg16[%c0_35, %c0_36] : memref<32x1xf32, #tpu.memory_space<vmem>>, vector<32x1xf32>
      tpu.vector_store %arg16[%c0_35, %c0_36], %50 {strides = array<i32>} : memref<32x1xf32, #tpu.memory_space<vmem>>, vector<32x1xf32>,
      %cst_37 = arith.constant 0.000000e+00 : f32
      %52 = vector.broadcast %cst_37 : f32 to vector<32x1xf32>
      %c0_38 = arith.constant 0 : index
      %c0_39 = arith.constant 0 : index
      %53 = vector.load %arg17[%c0_38, %c0_39] : memref<32x1xf32, #tpu.memory_space<vmem>>, vector<32x1xf32>
      tpu.vector_store %arg17[%c0_38, %c0_39], %52 {strides = array<i32>} : memref<32x1xf32, #tpu.memory_space<vmem>>, vector<32x1xf32>,
      %cst_40 = arith.constant 0.000000e+00 : f32
      %54 = vector.broadcast %cst_40 : f32 to vector<32x128xf32>
      %c0_41 = arith.constant 0 : index
      %c0_42 = arith.constant 0 : index
      %55 = vector.load %arg18[%c0_41, %c0_42] : memref<32x128xf32, #tpu.memory_space<vmem>>, vector<32x128xf32>
      tpu.vector_store %arg18[%c0_41, %c0_42], %54 {strides = array<i32>} : memref<32x128xf32, #tpu.memory_space<vmem>>, vector<32x128xf32>,
    } else {
    }
    %c0 = arith.constant 0 : index
    %c0_3 = arith.constant 0 : index
    %6 = vector.load %arg13[%c0, %c0_3] : memref<32x128xbf16, #tpu.memory_space<vmem>>, vector<32x128xbf16>
    %7 = arith.index_cast %arg2 : i32 to index
    %c0_4 = arith.constant 0 : index
    %c0_5 = arith.constant 0 : index
    %8 = vector.load %arg14[%7, %c0_4, %c0_5] : memref<2x32x128xbf16, #tpu.memory_space<vmem>>, vector<1x32x128xbf16>
    %9 = vector.shape_cast %8 : vector<1x32x128xbf16> to vector<32x128xbf16>
    %10 = arith.index_cast %arg2 : i32 to index
    %c0_6 = arith.constant 0 : index
    %c0_7 = arith.constant 0 : index
    %11 = vector.load %arg15[%10, %c0_6, %c0_7] : memref<2x32x128xbf16, #tpu.memory_space<vmem>>, vector<1x32x128xbf16>
    %12 = vector.shape_cast %11 : vector<1x32x128xbf16> to vector<32x128xbf16>
    %cst = arith.constant dense<0.000000e+00> : vector<32x32xf32>
    %13 = tpu.matmul %6, %9, %cst {dimension_numbers = #tpu.dot_dimension_numbers<[1], [1], [0], [0], [0, 0, 1, 0], [], []>} : vector<32x128xbf16>, vector<32x128xbf16>, vector<32x32xf32> -> vector<32x32xf32>
    %c0_8 = arith.constant 0 : index
    %c0_9 = arith.constant 0 : index
    %14 = vector.load %arg16[%c0_8, %c0_9] : memref<32x1xf32, #tpu.memory_space<vmem>>, vector<32x1xf32>
    %cst_10 = arith.constant dense<0xFF800000> : vector<32xf32>
    %15 = vector.multi_reduction <maximumf>, %13, %cst_10 [1] : vector<32x32xf32> to vector<32xf32>
    %16 = vector.shape_cast %15 : vector<32xf32> to vector<32x1xf32>
    %17 = arith.maximumf %14, %16 : vector<32x1xf32>
    %18 = arith.subf %14, %17 : vector<32x1xf32>
    %19 = math.exp %18 : vector<32x1xf32>
    %20 = vector.broadcast %17 : vector<32x1xf32> to vector<32x32xf32>
    %21 = arith.subf %13, %20 : vector<32x32xf32>
    %22 = math.exp %21 : vector<32x32xf32>
    %c0_11 = arith.constant 0 : index
    %c0_12 = arith.constant 0 : index
    %23 = vector.load %arg17[%c0_11, %c0_12] : memref<32x1xf32, #tpu.memory_space<vmem>>, vector<32x1xf32>
    %24 = arith.mulf %19, %23 : vector<32x1xf32>
    %cst_13 = arith.constant dense<0.000000e+00> : vector<32xf32>
    %25 = vector.multi_reduction <add>, %22, %cst_13 [1] : vector<32x32xf32> to vector<32xf32>
    %26 = vector.shape_cast %25 : vector<32xf32> to vector<32x1xf32>
    %27 = arith.addf %24, %26 : vector<32x1xf32>
    %c0_14 = arith.constant 0 : index
    %c0_15 = arith.constant 0 : index
    %28 = vector.load %arg17[%c0_14, %c0_15] : memref<32x1xf32, #tpu.memory_space<vmem>>, vector<32x1xf32>
    tpu.vector_store %arg17[%c0_14, %c0_15], %27 {strides = array<i32>} : memref<32x1xf32, #tpu.memory_space<vmem>>, vector<32x1xf32>,
    %c0_16 = arith.constant 0 : index
    %c0_17 = arith.constant 0 : index
    %29 = vector.load %arg18[%c0_16, %c0_17] : memref<32x128xf32, #tpu.memory_space<vmem>>, vector<32x128xf32>
    %30 = vector.broadcast %19 : vector<32x1xf32> to vector<32x128xf32>
    %31 = arith.mulf %30, %29 : vector<32x128xf32>
    %32 = arith.truncf %22 : vector<32x32xf32> to vector<32x32xbf16>
    %cst_18 = arith.constant dense<0.000000e+00> : vector<32x128xf32>
    %33 = tpu.matmul %32, %12, %cst_18 {dimension_numbers = #tpu.dot_dimension_numbers<[1], [0], [0], [1], [0, 0, 1, 1], [], []>} : vector<32x32xbf16>, vector<32x128xbf16>, vector<32x128xf32> -> vector<32x128xf32>
    %34 = arith.addf %31, %33 : vector<32x128xf32>
    %c0_19 = arith.constant 0 : index
    %c0_20 = arith.constant 0 : index
    %35 = vector.load %arg18[%c0_19, %c0_20] : memref<32x128xf32, #tpu.memory_space<vmem>>, vector<32x128xf32>
    tpu.vector_store %arg18[%c0_19, %c0_20], %34 {strides = array<i32>} : memref<32x128xf32, #tpu.memory_space<vmem>>, vector<32x128xf32>,
    %c0_21 = arith.constant 0 : index
    %c0_22 = arith.constant 0 : index
    %36 = vector.load %arg16[%c0_21, %c0_22] : memref<32x1xf32, #tpu.memory_space<vmem>>, vector<32x1xf32>
    tpu.vector_store %arg16[%c0_21, %c0_22], %17 {strides = array<i32>} : memref<32x1xf32, #tpu.memory_space<vmem>>, vector<32x1xf32>,
    %c1_i32 = arith.constant 1 : i32
    %37 = arith.cmpi eq, %arg2, %c1_i32 : i32
    %38 = arith.extui %37 : i1 to i32
    %c0_i32_23 = arith.constant 0 : i32
    %39 = arith.cmpi ne, %38, %c0_i32_23 : i32
    scf.if %39 {
      %c0_24 = arith.constant 0 : index
      %c0_25 = arith.constant 0 : index
      %40 = vector.load %arg17[%c0_24, %c0_25] : memref<32x1xf32, #tpu.memory_space<vmem>>, vector<32x1xf32>
      %41 = tpu.reciprocal %40 {approx = true} : vector<32x1xf32> -> vector<32x1xf32>
      %c0_26 = arith.constant 0 : index
      %42 = memref.load %arg3[%c0_26] : memref<1xf32, #tpu.memory_space<smem>>
      %c0_27 = arith.constant 0 : index
      %c0_28 = arith.constant 0 : index
      %43 = vector.load %arg18[%c0_27, %c0_28] : memref<32x128xf32, #tpu.memory_space<vmem>>, vector<32x128xf32>
      %44 = vector.broadcast %41 : vector<32x1xf32> to vector<32x128xf32>
      %45 = arith.mulf %43, %44 : vector<32x128xf32>
      %46 = vector.broadcast %42 : f32 to vector<32x128xf32>
      %47 = arith.mulf %46, %45 : vector<32x128xf32>
      %c0_29 = arith.constant 0 : index
      %c0_30 = arith.constant 0 : index
      %c0_31 = arith.constant 0 : index
      %48 = vector.load %arg4[%c0_29, %c0_30, %c0_31] : memref<1x32x128xf32, #tpu.memory_space<vmem>>, vector<1x32x128xf32>
      %49 = vector.shape_cast %48 : vector<1x32x128xf32> to vector<32x128xf32>
      %50 = arith.addf %47, %49 : vector<32x128xf32>
      %c0_32 = arith.constant 0 : index
      %c0_33 = arith.constant 0 : index
      %c0_34 = arith.constant 0 : index
      %51 = vector.load %arg12[%c0_32, %c0_33, %c0_34] : memref<1x32x128xf32, #tpu.memory_space<vmem>>, vector<1x32x128xf32>
      %52 = vector.shape_cast %51 : vector<1x32x128xf32> to vector<32x128xf32>
      %53 = vector.shape_cast %50 : vector<32x128xf32> to vector<1x32x128xf32>
      tpu.vector_store %arg12[%c0_32, %c0_33, %c0_34], %53 {strides = array<i32>} : memref<1x32x128xf32, #tpu.memory_space<vmem>>, vector<1x32x128xf32>,
    } else {
    }
    return
  }
  func.func @transform_0(%arg0: i32, %arg1: i32, %arg2: i32) -> i32 {
    %c0_i32 = arith.constant 0 : i32
    %c0_i32_0 = arith.constant 0 : i32
    return %c0_i32 : i32
  }
  func.func @transform_1(%arg0: i32, %arg1: i32, %arg2: i32) -> (i32, i32, i32) {
    %c0_i32 = arith.constant 0 : i32
    %c0_i32_0 = arith.constant 0 : i32
    return %arg0, %arg1, %c0_i32 : i32, i32, i32
  }
  func.func @transform_2(%arg0: i32, %arg1: i32, %arg2: i32) -> (i32, i32, i32) {
    %c0_i32 = arith.constant 0 : i32
    %0 = arith.cmpi eq, %arg1, %c0_i32 : i32
    %c1_i32 = arith.constant 1 : i32
    %1 = arith.select %0, %arg2, %c1_i32 : i32
    %c0_i32_0 = arith.constant 0 : i32
    %c0_i32_1 = arith.constant 0 : i32
    return %arg0, %1, %c0_i32_0 : i32, i32, i32
  }
  func.func @transform_3(%arg0: i32, %arg1: i32, %arg2: i32) -> (i32, i32) {
    %c0_i32 = arith.constant 0 : i32
    %c0_i32_0 = arith.constant 0 : i32
    %c0_i32_1 = arith.constant 0 : i32
    return %c0_i32, %c0_i32_0 : i32, i32
  }
  func.func @transform_4(%arg0: i32, %arg1: i32, %arg2: i32) -> (i32, i32) {
    %c0_i32 = arith.constant 0 : i32
    %c0_i32_0 = arith.constant 0 : i32
    %c0_i32_1 = arith.constant 0 : i32
    return %c0_i32, %c0_i32_0 : i32, i32
  }
  func.func @transform_5(%arg0: i32, %arg1: i32, %arg2: i32) -> (i32, i32) {
    %c0_i32 = arith.constant 0 : i32
    %c0_i32_0 = arith.constant 0 : i32
    %c0_i32_1 = arith.constant 0 : i32
    return %c0_i32, %c0_i32_0 : i32, i32
  }
  func.func @transform_6(%arg0: i32, %arg1: i32, %arg2: i32) -> (i32, i32) {
    %c0_i32 = arith.constant 0 : i32
    %c0_i32_0 = arith.constant 0 : i32
    %c0_i32_1 = arith.constant 0 : i32
    return %c0_i32, %c0_i32_0 : i32, i32
  }
  func.func @transform_7(%arg0: i32, %arg1: i32, %arg2: i32) -> (i32, i32) {
    %c0_i32 = arith.constant 0 : i32
    %c0_i32_0 = arith.constant 0 : i32
    %c0_i32_1 = arith.constant 0 : i32
    return %c0_i32, %c0_i32_0 : i32, i32
  }
  func.func @transform_8(%arg0: i32, %arg1: i32, %arg2: i32) -> (i32, i32) {
    %c0_i32 = arith.constant 0 : i32
    %c0_i32_0 = arith.constant 0 : i32
    %c0_i32_1 = arith.constant 0 : i32
    return %c0_i32, %c0_i32_0 : i32, i32
  }
  func.func @transform_9(%arg0: i32, %arg1: i32, %arg2: i32) -> (i32, i32, i32) {
    %c0_i32 = arith.constant 0 : i32
    %c0_i32_0 = arith.constant 0 : i32
    return %arg0, %arg1, %c0_i32 : i32, i32, i32
  }
}

</mosaic_0001>

<bundles_post_ra>
// kernel: dam_position.1
= control target key start
LH: loop header
LB: loop body
LE: loop exit
PB: predicated region body
PF: predicated region fallthrough
CT: control target
= control target key end

     0   :  { %s1828_s11 = smov 0   ;;  %s1830_s12 = smov 0   ;;  %s2045_s0 = inlined_call_operand.<no memory space> [shape: f32[1], index: 0, kind: input, shape index: {}]   ;;  %s2046_s1 = inlined_call_operand.vmem [shape: f32[2,64,128], index: 1, kind: input, shape index: {}, may-alias: {1,2}]   ;;  %s2047_s2 = inlined_call_operand.vmem [shape: f32[2,64,128], index: 2, kind: input, shape index: {}, may-alias: {1,2}]   ;;  %s2048_s3 = inlined_call_operand.vmem [shape: bf16[128,128], index: 3, kind: input, shape index: {}]   ;;  %s2049_s4 = inlined_call_operand.vmem [shape: f32[1,128], index: 4, kind: input, shape index: {}]   ;;  %s2050_s5 = inlined_call_operand.vmem [shape: bf16[128,128], index: 5, kind: input, shape index: {}]   ;;  %s2051_s6 = inlined_call_operand.vmem [shape: f32[1,128], index: 6, kind: input, shape index: {}]   ;;  %s2052_s7 = inlined_call_operand.vmem [shape: bf16[128,128], index: 7, kind: input, shape index: {}]   ;;  %s2053_s8 = inlined_call_operand.vmem [shape: f32[1,128], index: 8, kind: input, shape index: {}]   ;;  %s2054_s9 = inlined_call_operand.vmem [shape: f32[2,64,128], index: 9, kind: output, shape index: {}]  }
   0x1   :  { %14 = sst [smem:[#allocation8]] %s2045_s0  ;;  %s1832_s13 = smov 0  }
   0x2   :  { %s1834_s14 = smov 0   ;;  %s1836_s15 = smov 0  }
   0x3   :  { %s1838_s16 = smov 0   ;;  %s1840_s17 = smov 0  }
   0x4 LB: > { %s32_s0 = sadd.s32 1, %s1757_s14  ;;  %s35_s18 = sadd.s32 1, %s1761_s15  ;;  %s1769_s17 = sphi %s1840_s17, %s20_s17   ;;  %s1765_s16 = sphi %s1838_s16, %s2066_s16   ;;  %s1761_s15 = sphi %s1836_s15, %s2065_s15   ;;  %s1757_s14 = sphi %s1834_s14, %s2064_s14   ;;  %s1753_s13 = sphi %s1832_s13, %s2063_s13   ;;  %s1749_s12 = sphi %s1830_s12, %s2062_s12   ;;  %s1745_s11 = sphi %s1828_s11, %s2061_s11  }
   0x5   : > { %p33_p0 = scmp.ge.s32.totalorder %s32_s0, 2  ;;  %p1366_p1 = scmp.ge.s32.totalorder %s1769_s17, 1 }
   0x6   : > { %p341_p2 = scmp.lt.s32.totalorder %s1769_s17, 9  ;;  %s39_s19 = sadd.s32 1, %s1765_s16 }
   0x7   : > { %s2068_s0 = smov (%p33_p0, %s32_s0), 0  ;;  %s2070_s18 = smov (!%p33_p0, %s35_s18), %s1761_s15 }
   0x8   : > { %2055 = sst [smem:[#allocation9_spill]] %s2068_s0  ;;  %p342_p3 = pnand %p1366_p1, %p341_p2 }
   0x9   : > { %p37_p4 = scmp.ge.s32.totalorder %s2070_s18, 2  ;;  %s1367_s20 = sshll.u32 (!%p342_p3), %s1749_s12, 2 }
   0xa   : > { %p397_p6 = scmp.lt.s32.totalorder (!%p342_p3), %s1753_s13, 1  ;;  %p399_p7 = scmp.lt.s32.totalorder (!%p342_p3), %s1367_s20, 7 }
   0xb   : > { %s2072_s18 = smov (%p37_p4, %s2070_s18), 0  ;;  %s2074_s19 = smov (!%p37_p4, %s39_s19), %s1765_s16 }
   0xc   : > { %2056 = sst [smem:[#allocation10_spill]] %s2072_s18  ;;  %p41_p5 = scmp.ge.s32.totalorder %s2074_s19, 2 }
   0xd   : > { %345 = sbr.rel (%p342_p3) target bundleno = 1374 (0x55e), region = 56  ;;  %p406_p8 = scmp.eq.s32.totalorder (!%p342_p3), %s1749_s12, 0 }
   0xe   : > { %s2076_s19 = smov (%p41_p5, %s2074_s19), 0  ;;  %p1376_p10 = scmp.ne.s32.totalorder (!%p342_p3), %s1749_s12, 0 }
   0xf   : > { %2057 = sst [smem:[#allocation11_spill]] %s2076_s19 }
  0x12   : > { %s2078_s13 = smov (!%p397_p6, %s1753_s13), 1  ;;  %s2080_s20 = smov (!%p399_p7, %s1367_s20), 7 }
  0x13   : > { %s1368_s21 = sshll.u32 %s2078_s13, 3 }
  0x14   : > { %s402_s22 = sadd.s32 %s1368_s21, %s2080_s20 }
  0x15   : > { %s1369_s23 = sshll.u32 %s402_s22, 3 }
  0x16   : > { %s1879_s26 = scalar_lea.vmem %s2046_s1, %s1369_s23  ;;  %s1884_s29 = scalar_lea.vmem %s2054_s9, %s1369_s23 }
  0x17   : > { %s407_s30 = scalar_select %p406_p8, %s1745_s11, 1 }
  0x19   : > { %s1370_s10 = sshll.u32 %s407_s30, 2 }
  0x1a   : > { %p411_p9 = scmp.lt.s32.totalorder %s1370_s10, 7 }
  0x1b   : > { %434 = sbr.rel (%p1376_p10) target bundleno = 270 (0x10e), region = 60 }
  0x1c   : > { %s2082_s10 = smov (!%p411_p9, %s1370_s10), 7 }
  0x1d   : > { %s414_s19 = sadd.s32 %s1368_s21, %s2082_s10 }
  0x1e   : > { %s1372_s18 = sshll.u32 %s414_s19, 3 }
  0x1f   : > { %s1890_s20 = scalar_lea.vmem %s2047_s2, %s1372_s18 }
  0x20   : > { %v1657_v0 = vld [vmem:[%s2050_s5 + $0x38] sm:$0xff]   ;;  %v1659_v2 = vld [vmem:[%s2050_s5 + $0x30] sm:$0xff]   ;;  %v1661_v4 = vld [vmem:[%s2050_s5 + $0x28] sm:$0xff]  }
  0x21   : > { %v1658_v1 = vld [vmem:[%s2052_s7 + $0x38] sm:$0xff]   ;;  %1521 = vmatprep.subr.bf16.mxu0 %v1657_v0  ;;  %v1660_v3 = vld [vmem:[%s2052_s7 + $0x30] sm:$0xff]   ;;  %v1662_v5 = vld [vmem:[%s2052_s7 + $0x28] sm:$0xff]  }
  0x22   : > { %1541 = vmatprep.subr.bf16.mxu1 %v1658_v1  ;;  %1522 = vmatpush3.bf16.msra.mxu0 %v1657_v0  ;;  %v1663_v6 = vld [vmem:[%s2050_s5 + $0x20] sm:$0xff]   ;;  %v1665_v8 = vld [vmem:[%s2050_s5 + $0x18] sm:$0xff]   ;;  %v1667_v10 = vld [vmem:[%s2050_s5 + $0x10] sm:$0xff]  }
  0x23   : > { %1542 = vmatpush3.bf16.msra.mxu1 %v1658_v1  ;;  %1523 = vmatprep.subr.bf16.mxu0 %v1659_v2  ;;  %v1664_v7 = vld [vmem:[%s2052_s7 + $0x20] sm:$0xff]   ;;  %v1666_v9 = vld [vmem:[%s2052_s7 + $0x18] sm:$0xff]   ;;  %v436_v12 = vld [vmem:[%s1890_s20 + $0x8] sm:$0xff] }
  0x24   : > { %1543 = vmatprep.subr.bf16.mxu1 %v1660_v3  ;;  %v435_v11 = vld [vmem:[%s1890_s20] sm:$0xff]  ;;  %v1668_v13 = vld [vmem:[%s2052_s7 + $0x10] sm:$0xff]   ;;  %v1669_v15 = vld [vmem:[%s2050_s5 + $0x8] sm:$0xff]  }
  0x25   : > { %v439_v14 = vpack.c.bf16 %v436_v12, %v435_v11  ;;  %v1670_v16 = vld [vmem:[%s2052_s7 + $0x8] sm:$0xff]   ;;  %v1671_v17 = vld [vmem:[%s2050_s5] sm:$0xff]   ;;  %v437_v19 = vld [vmem:[%s1890_s20 + $0x10] sm:$0xff] }
  0x26   : > { %1524 = vmatpush3.bf16.msra.mxu0 %v1659_v2  ;;  %v1672_v18 = vld [vmem:[%s2052_s7] sm:$0xff]   ;;  %v438_v20 = vld [vmem:[%s1890_s20 + $0x18] sm:$0xff]  ;;  %s1438_s20 = sshll.u32 %s1745_s11, 4 }
  0x27   : > { %1544 = vmatpush3.bf16.msra.mxu1 %v1660_v3  ;;  %1525 = vmatprep.subr.bf16.mxu0 %v1661_v4  ;;  %v440_v21 = vpack.c.bf16 %v438_v20, %v437_v19  ;;  %v1377_v24 = vld [vmem:[%s2051_s6] ss:$0 sm:$0xff]  ;;  %s699_s12 = scalar_lea.vmem [#allocation3], %s1438_s20  ;;  %s721_s19 = scalar_lea.vmem [#allocation4], %s1438_s20 }
  0x28   : > { %1545 = vmatprep.subr.bf16.mxu1 %v1662_v5  ;;  %1537 = vmatprep.mubr.bf16.mxu0 %v439_v14  ;;  %v1386_v26 = vld [vmem:[%s2053_s8] ss:$0 sm:$0xff] }
  0x29   : > { %1557 = vmatprep.mubr.bf16.mxu1 %v439_v14 }
  0x2a   : > { %1526 = vmatpush3.bf16.msra.mxu0 %v1661_v4 }
  0x2b   : > { %1546 = vmatpush3.bf16.msra.mxu1 %v1662_v5  ;;  %1527 = vmatprep.subr.bf16.mxu0 %v1663_v6 }
  0x2c   : > { %1547 = vmatprep.subr.bf16.mxu1 %v1664_v7 }
  0x2e   : > { %1528 = vmatpush3.bf16.msra.mxu0 %v1663_v6 }
  0x2f   : > { %1548 = vmatpush3.bf16.msra.mxu1 %v1664_v7  ;;  %1529 = vmatprep.subr.bf16.mxu0 %v1665_v8 }
  0x30   : > { %1549 = vmatprep.subr.bf16.mxu1 %v1666_v9 }
  0x32   : > { %1530 = vmatpush3.bf16.msra.mxu0 %v1665_v8 }
  0x33   : > { %1550 = vmatpush3.bf16.msra.mxu1 %v1666_v9  ;;  %1531 = vmatprep.subr.bf16.mxu0 %v1667_v10 }
  0x34   : > { %1551 = vmatprep.subr.bf16.mxu1 %v1668_v13 }
  0x36   : > { %1532 = vmatpush3.bf16.msra.mxu0 %v1667_v10 }
  0x37   : > { %1552 = vmatpush3.bf16.msra.mxu1 %v1668_v13  ;;  %1533 = vmatprep.subr.bf16.mxu0 %v1669_v15 }
  0x38   : > { %1553 = vmatprep.subr.bf16.mxu1 %v1670_v16 }
  0x3a   : > { %1534 = vmatpush3.bf16.msra.mxu0 %v1669_v15 }
  0x3b   : > { %1554 = vmatpush3.bf16.msra.mxu1 %v1670_v16  ;;  %1535 = vmatprep.subr.bf16.mxu0 %v1671_v17 }
  0x3c   : > { %1555 = vmatprep.subr.bf16.mxu1 %v1672_v18 }
  0x3e   : > { %1536 = vmatpush3.bf16.msra.mxu0 %v1671_v17 }
  0x3f   : > { %1556 = vmatpush3.bf16.msra.mxu1 %v1672_v18 }
  0x41   : > { %1538 = vmatmul.mubr.bf16.vlgmr.msra.gmra.mxu0 %v440_v21 }
  0x42   : > { %1558 = vmatmul.mubr.bf16.vlgmr.msra.gmra.mxu1 %v440_v21 }
 0x101   : > { %v1539_v22 = vpop.f32.mrf.mxu0 }
 0x102   : > { %v1559_v23 = vpop.f32.mrf.mxu1  ;;  %v555_v29 = vadd.f32 %v1539_v22, %v1377_v24 }
 0x103   : > { %v546_v25 = vpop.f32.mrf.mxu0  ;;  %v675_v32 = vadd.f32 %v1559_v23, %v1386_v26 }
 0x104   : > { %v666_v27 = vpop.f32.mrf.mxu1  ;;  %v547_v35 = vadd.f32 %v1377_v24, %v546_v25 }
 0x105   : > { %v1540_v28 = vpop.f32.mrf.mxu0  ;;  %v667_v39 = vadd.f32 %v1386_v26, %v666_v27 }
 0x106   : > { %v558_v30 = vadd.f32 %v1540_v28, %v1377_v24  ;;  %v1560_v31 = vpop.f32.mrf.mxu1 }
 0x107   : > { %v678_v33 = vadd.f32 %v1560_v31, %v1386_v26  ;;  %v549_v34 = vpop.f32.mrf.mxu0 }
 0x108   : > { %v1458_v36 = vpack.c.bf16 %v558_v30, %v555_v29  ;;  %v550_v37 = vadd.f32 %v1377_v24, %v549_v34  ;;  %v669_v38 = vpop.f32.mrf.mxu1 }
 0x109   : > { %v1468_v40 = vpack.c.bf16 %v678_v33, %v675_v32  ;;  %v670_v41 = vadd.f32 %v1386_v26, %v669_v38 }
 0x10a   : > { %1480 = vst [vmem:[%s699_s12 + $0x8] sm:$0xff] %v1458_v36   ;;  %v1453_v42 = vpack.c.bf16 %v550_v37, %v547_v35 }
 0x10b   : > { %1481 = vst [vmem:[%s721_s19 + $0x8] sm:$0xff] %v1468_v40   ;;  %v1463_v43 = vpack.c.bf16 %v670_v41, %v667_v39 }
 0x10c   : > { %1454 = vst [vmem:[%s699_s12] sm:$0xff] %v1453_v42  }
 0x10d   : > { %1464 = vst [vmem:[%s721_s19] sm:$0xff] %v1463_v43  }
 0x10e PF: > { %p1406_p11 = scmp.ne.s32.totalorder %s1745_s11, 0 }
 0x110   : > { %729 = sbr.rel (%p1406_p11) target bundleno = 514 (0x202), region = 64 }
 0x115   : > { %v1673_v44 = vld [vmem:[%s2048_s3 + $0x38] sm:$0xff]   ;;  %v1674_v45 = vld [vmem:[%s2048_s3 + $0x30] sm:$0xff]   ;;  %v1675_v46 = vld [vmem:[%s2048_s3 + $0x28] sm:$0xff]   ;;  %vm876_vm0 = vcmask 7168   ;;  %v1771_v58 = vmov -inf   ;;  %v1772_v59 = vmov 0.0  }
 0x116   : > { %1561 = vmatprep.subr.bf16.mxu0 %v1673_v44  ;;  %v1676_v47 = vld [vmem:[%s2048_s3 + $0x20] sm:$0xff]   ;;  %v731_v49 = vld [vmem:[%s1879_s26 + $0x8] sm:$0xff]  ;;  %v1677_v51 = vld [vmem:[%s2048_s3 + $0x18] sm:$0xff]   ;;  %877 = vst.msk [vmem:[#allocation5] sm:$0xff] %vm876_vm0, %v1771_v58 }
 0x117   : > { %1562 = vmatpush3.bf16.msra.mxu0 %v1673_v44  ;;  %v730_v48 = vld [vmem:[%s1879_s26] sm:$0xff]  ;;  %v1678_v52 = vld [vmem:[%s2048_s3 + $0x10] sm:$0xff]   ;;  %v1679_v53 = vld [vmem:[%s2048_s3 + $0x8] sm:$0xff]   ;;  %878 = vst.msk [vmem:[#allocation5 + $0x8] sm:$0xff] %vm876_vm0, %v1771_v58 }
 0x118   : > { %1563 = vmatprep.subr.bf16.mxu0 %v1674_v45  ;;  %v734_v50 = vpack.c.bf16 %v731_v49, %v730_v48  ;;  %v1680_v54 = vld [vmem:[%s2048_s3] sm:$0xff]   ;;  %v732_v55 = vld [vmem:[%s1879_s26 + $0x10] sm:$0xff]  ;;  %v733_v56 = vld [vmem:[%s1879_s26 + $0x18] sm:$0xff]  ;;  %879 = vst.msk [vmem:[#allocation5 + $0x10] sm:$0xff] %vm876_vm0, %v1771_v58 }
 0x119   : > { %v735_v57 = vpack.c.bf16 %v733_v56, %v732_v55  ;;  %880 = vst.msk [vmem:[#allocation5 + $0x18] sm:$0xff] %vm876_vm0, %v1771_v58  ;;  %881 = vst.msk [vmem:[#allocation6] sm:$0xff] %vm876_vm0, %v1772_v59  ;;  %v1407_v61 = vld [vmem:[%s2049_s4] ss:$0 sm:$0xff] }
 0x11a   : > { %1577 = vmatprep.mubr.bf16.mxu0 %v734_v50  ;;  %882 = vst.msk [vmem:[#allocation6 + $0x8] sm:$0xff] %vm876_vm0, %v1772_v59  ;;  %883 = vst.msk [vmem:[#allocation6 + $0x10] sm:$0xff] %vm876_vm0, %v1772_v59 }
 0x11b   : > { %1564 = vmatpush3.bf16.msra.mxu0 %v1674_v45  ;;  %884 = vst.msk [vmem:[#allocation6 + $0x18] sm:$0xff] %vm876_vm0, %v1772_v59  ;;  %885 = vst [vmem:[#allocation7 + $0x10] sm:$0xff] %v1772_v59 }
 0x11c   : > { %1565 = vmatprep.subr.bf16.mxu0 %v1675_v46  ;;  %886 = vst [vmem:[#allocation7] sm:$0xff] %v1772_v59  ;;  %887 = vst [vmem:[#allocation7 + $0x18] sm:$0xff] %v1772_v59 }
 0x11d   : > { %888 = vst [vmem:[#allocation7 + $0x8] sm:$0xff] %v1772_v59 }
 0x11f   : > { %1566 = vmatpush3.bf16.msra.mxu0 %v1675_v46 }
 0x120   : > { %1567 = vmatprep.subr.bf16.mxu0 %v1676_v47 }
 0x123   : > { %1568 = vmatpush3.bf16.msra.mxu0 %v1676_v47 }
 0x124   : > { %1569 = vmatprep.subr.bf16.mxu0 %v1677_v51 }
 0x127   : > { %1570 = vmatpush3.bf16.msra.mxu0 %v1677_v51 }
 0x128   : > { %1571 = vmatprep.subr.bf16.mxu0 %v1678_v52 }
 0x12b   : > { %1572 = vmatpush3.bf16.msra.mxu0 %v1678_v52 }
 0x12c   : > { %1573 = vmatprep.subr.bf16.mxu0 %v1679_v53 }
 0x12f   : > { %1574 = vmatpush3.bf16.msra.mxu0 %v1679_v53 }
 0x130   : > { %1575 = vmatprep.subr.bf16.mxu0 %v1680_v54 }
 0x133   : > { %1576 = vmatpush3.bf16.msra.mxu0 %v1680_v54 }
 0x136   : > { %1578 = vmatmul.mubr.bf16.vlgmr.msra.gmra.mxu0 %v735_v57 }
 0x1f6   : > { %v1579_v60 = vpop.f32.mrf.mxu0 }
 0x1f7   : > { %v850_v0 = vadd.f32 %v1579_v60, %v1407_v61 }
 0x1f8   : > { %v841_v62 = vpop.f32.mrf.mxu0 }
 0x1f9   : > { %v842_v3 = vadd.f32 %v1407_v61, %v841_v62 }
 0x1fa   : > { %v1580_v63 = vpop.f32.mrf.mxu0 }
 0x1fb   : > { %v853_v1 = vadd.f32 %v1580_v63, %v1407_v61 }
 0x1fc   : > { %v844_v2 = vpop.f32.mrf.mxu0 }
 0x1fd   : > { %v1478_v4 = vpack.c.bf16 %v853_v1, %v850_v0  ;;  %v845_v5 = vadd.f32 %v1407_v61, %v844_v2 }
 0x1ff   : > { %1482 = vst [vmem:[#allocation2 + $0x8] sm:$0xff] %v1478_v4   ;;  %v1473_v6 = vpack.c.bf16 %v845_v5, %v842_v3 }
 0x201   : > { %1474 = vst [vmem:[#allocation2] sm:$0xff] %v1473_v6  }
 0x202 PF: > { %s1448_s13 = sshll.u32 %s1745_s11, 4  ;;  %vm983_vm1 = vcmask 261120   ;;  %v1773_v19 = vmov 0   ;;  %v1991_v20 = vld [vmem:[#allocation5 + $0x10] sm:$0xff]  ;;  %vm1068_vm2 = vcmask 7168   ;;  %v979_v22 = vld [vmem:[#allocation5] sm:$0xff] }
 0x203   : > { %s895_s22 = scalar_lea.vmem [#allocation3], %s1448_s13  ;;  %1682 = vset.pattern.permute.xlu1 %v1773_v19  ;;  %1681 = vset.pattern.permute.xlu0 %v1773_v19  ;;  %v1994_v25 = vld [vmem:[#allocation5 + $0x18] sm:$0xff]  ;;  %v980_v29 = vld [vmem:[#allocation5 + $0x8] sm:$0xff]  ;;  %s901_s24 = scalar_lea.vmem [#allocation4], %s1448_s13  ;;  %v1046_v5 = vld [vmem:[#allocation6 + $0x10] sm:$0xff] }
 0x204   : > { %v1683_v8 = vld [vmem:[%s895_s22 + $0x8] sm:$0xff]   ;;  %v1684_v9 = vld [vmem:[%s895_s22] sm:$0xff]   ;;  %p1431_p12 = scmp.ne.s32.totalorder %s1745_s11, 1 }
 0x205   : > { %1581 = vmatprep.subr.bf16.mxu0 %v1683_v8  ;;  %v1687_v37 = vld [vmem:[%s901_s24 + $0x8] sm:$0xff]   ;;  %v1688_v39 = vld [vmem:[%s901_s24] sm:$0xff]   ;;  %s1194_s11 = sld [smem:[#allocation8]] (!%p1431_p12) }
 0x206   : > { %1582 = vmatpush3.bf16.xpose.msra.mxu0 %v1683_v8  ;;  %v1686_v10 = vld [vmem:[#allocation2 + $0x8] sm:$0xff]   ;;  %1589 = vmatprep.subr.bf16.mxu1 %v1687_v37  ;;  %v1044_v8 = vld [vmem:[#allocation6] sm:$0xff] }
 0x207   : > { %1583 = vmatprep.subr.bf16.mxu0 %v1684_v9  ;;  %1590 = vmatpush3.bf16.msra.mxu1 %v1687_v37 }
 0x208   : > { %v1685_v7 = vld [vmem:[#allocation2] sm:$0xff]   ;;  %1591 = vmatprep.subr.bf16.mxu1 %v1688_v39 }
 0x209   : > { %1585 = vmatprep.mubr.bf16.mxu0 %v1685_v7 }
 0x20b   : > { %1592 = vmatpush3.bf16.msra.mxu1 %v1688_v39 }
 0x20e   : > { %1584 = vmatpush3.bf16.xpose.msra.mxu0 %v1684_v9 }
 0x215   : > { %1586 = vmatmul.mubr.bf16.vlgmr.msra.gmra.mxu0 %v1686_v10  ;;  %v1045_v10 = vld [vmem:[#allocation6 + $0x8] sm:$0xff] }
 0x2d5   : > { %v1587_v11 = vpop.f32.mrf.mxu0 }
 0x2d6   : > { %v990_v12 = vsel %vm983_vm1, %v1587_v11, -inf }
 0x2d7   : > { %991 = vmax.xlane.f32.xlu1 %v990_v12  ;;  %v964_v13 = vpop.f32.mrf.mxu0 }
 0x2d8   : > { %v984_v14 = vsel %vm983_vm1, %v964_v13, -inf }
 0x2d9   : > { %985 = vmax.xlane.f32.xlu0 %v984_v14  ;;  %v1588_v15 = vpop.f32.mrf.mxu0 }
 0x2da   : > { %v993_v16 = vsel %vm983_vm1, %v1588_v15, -inf }
 0x2db   : > { %994 = vmax.xlane.f32.xlu1 %v993_v16  ;;  %v967_v17 = vpop.f32.mrf.mxu0  ;;  %v1047_v16 = vld [vmem:[#allocation6 + $0x18] sm:$0xff] }
 0x2dc   : > { %v987_v18 = vsel %vm983_vm1, %v967_v17, -inf }
 0x2dd   : > { %988 = vmax.xlane.f32.xlu0 %v987_v18 }
 0x360   : > { %v992_v21 = vpop.xlane.xlu1 %991 }
 0x361   : > { %v998_v23 = vmax.f32 %v1991_v20, %v992_v21 }
 0x362   : > { %v986_v24 = vpop.xlane.xlu0 %985 }
 0x363   : > { %v1002_v26 = vsub.f32 %v1991_v20, %v998_v23  ;;  %1180 = vst.msk [vmem:[#allocation5 + $0x10] sm:$0xff] %vm1068_vm2, %v998_v23  ;;  %v996_v27 = vmax.f32 %v979_v22, %v986_v24  ;;  %1024 = vperm.xlu1 %1682, %v998_v23   ;;  %v1073_v23 = vld [vmem:[#allocation7 + $0x10] sm:$0xff] }
 0x364   : > { %v995_v28 = vpop.xlane.xlu1 %994 }
 0x365   : > { %v1000_v30 = vsub.f32 %v979_v22, %v996_v27  ;;  %1178 = vst.msk [vmem:[#allocation5] sm:$0xff] %vm1068_vm2, %v996_v27  ;;  %v999_v31 = vmax.f32 %v1994_v25, %v995_v28  ;;  %1014 = vperm.xlu0 %1681, %v996_v27   ;;  %v1008_v60 = vmul.f32 1.442695, %v1002_v26  ;;  %v1075_v22 = vld [vmem:[#allocation7 + $0x18] sm:$0xff] }
 0x366   : > { %v989_v32 = vpop.xlane.xlu0 %988 }
 0x367   : > { %v1004_v33 = vmul.f32 1.442695, %v1000_v30  ;;  %v1003_v34 = vsub.f32 %v1994_v25, %v999_v31  ;;  %1181 = vst.msk [vmem:[#allocation5 + $0x18] sm:$0xff] %vm1068_vm2, %v999_v31  ;;  %v997_v35 = vmax.f32 %v980_v29, %v989_v32  ;;  %v1076_v25 = vld [vmem:[#allocation7 + $0x8] sm:$0xff]  ;;  %v1074_v30 = vld [vmem:[#allocation7] sm:$0xff] }
 0x369   : > { %1689 = vpow2.f32 %v1004_v33  ;;  %v1001_v36 = vsub.f32 %v980_v29, %v997_v35  ;;  %1179 = vst.msk [vmem:[#allocation5 + $0x8] sm:$0xff] %vm1068_vm2, %v997_v35  ;;  %1019 = vperm.xlu1 %1682, %v997_v35   ;;  %v1010_v0 = vmul.f32 1.442695, %v1003_v34 }
 0x36b   : > { %v1006_v63 = vmul.f32 1.442695, %v1001_v36 }
 0x36d   : > { %1029 = vperm.xlu1 %1682, %v999_v31  }
 0x376   : > { %v1690_v38 = vpop.eup %1689 }
 0x377   : > { %1079 = vperm.xlu1 %1682, %v1690_v38  }
 0x3de   : > { %v1025_v40 = vpop.permute.xlu1 %1024 }
 0x3df   : > { %v1034_v41 = vsub.f32 %v1587_v11, %v1025_v40  ;;  %v1048_v11 = vmul.f32 %v1690_v38, %v1044_v8 }
 0x3e0   : > { %v1015_v42 = vpop.permute.xlu0 %1014 }
 0x3e1   : > { %v1040_v43 = vmul.f32 1.442695, %v1034_v41  ;;  %v1032_v44 = vsub.f32 %v964_v13, %v1015_v42 }
 0x3e3   : > { %1691 = vpow2.f32 %v1040_v43  ;;  %v1036_v45 = vmul.f32 1.442695, %v1032_v44 }
 0x3e4   : > { %v1020_v46 = vpop.permute.xlu1 %1019 }
 0x3e5   : > { %1693 = vpow2.f32 %v1036_v45  ;;  %v1033_v47 = vsub.f32 %v967_v17, %v1020_v46 }
 0x3e7   : > { %v1038_v48 = vmul.f32 1.442695, %v1033_v47 }
 0x3e8   : > { %v1030_v49 = vpop.permute.xlu1 %1029 }
 0x3e9   : > { %1695 = vpow2.f32 %v1038_v48  ;;  %v1035_v50 = vsub.f32 %v1588_v15, %v1030_v49 }
 0x3eb   : > { %v1042_v51 = vmul.f32 1.442695, %v1035_v50 }
 0x3ed   : > { %1697 = vpow2.f32 %v1042_v51 }
 0x3ee   : > { %1699 = vpow2.f32 %v1008_v60 }
 0x3ef   : > { %1701 = vpow2.f32 %v1006_v63 }
 0x3f0   : > { %v1692_v52 = vpop.eup %1691  ;;  %1703 = vpow2.f32 %v1010_v0 }
 0x3f1   : > { %v1058_v53 = vsel %vm983_vm1, %v1692_v52, 0.0 }
 0x3f2   : > { %v1694_v54 = vpop.eup %1693  ;;  %1059 = vadd.xlane.f32.xlu1 %v1058_v53  ;;  %v1080_v4 = vpop.permute.xlu1 %1079 }
 0x3f3   : > { %v1052_v55 = vsel %vm983_vm1, %v1694_v54, 0.0  ;;  %v1097_v28 = vmul.f32 %v1080_v4, %v1073_v23 }
 0x3f6   : > { %v1696_v56 = vpop.eup %1695  ;;  %1053 = vadd.xlane.f32.xlu1 %v1052_v55 }
 0x3f7   : > { %v1055_v57 = vsel %vm983_vm1, %v1696_v56, 0.0  ;;  %v1101_v58 = vpack.c.bf16 %v1696_v56, %v1694_v54 }
 0x3f8   : > { %1056 = vadd.xlane.f32.xlu0 %v1055_v57 }
 0x3f9   : > { %1593 = vmatprep.mubr.msk.bf16.mxu1 %vm983_vm1, %v1101_v58 }
 0x3fa   : > { %v1698_v59 = vpop.eup %1697 }
 0x3fb   : > { %v1061_v61 = vsel %vm983_vm1, %v1698_v59, 0.0  ;;  %v1102_v62 = vpack.c.bf16 %v1698_v59, %v1692_v52  ;;  %v1700_v1 = vpop.eup %1699 }
 0x3fc   : > { %1062 = vadd.xlane.f32.xlu1 %v1061_v61  ;;  %v1702_v2 = vpop.eup %1701  ;;  %v1050_v6 = vmul.f32 %v1700_v1, %v1046_v5 }
 0x3fd   : > { %1594 = vmatmul.mubr.msk.bf16.vlgmr.msra.gmra.mxu1 %vm983_vm1, %v1102_v62  ;;  %v1704_v3 = vpop.eup %1703  ;;  %v1049_v14 = vmul.f32 %v1702_v2, %v1045_v10 }
 0x3fe   : > { %v1051_v18 = vmul.f32 %v1704_v3, %v1047_v16 }
 0x40d   : > { %1089 = vperm.xlu1 %1682, %v1700_v1  }
 0x40e   : > { %1084 = vperm.xlu0 %1681, %v1702_v2  }
 0x411   : > { %1094 = vperm.xlu1 %1682, %v1704_v3  }
 0x47b   : > { %v1060_v7 = vpop.xlane.xlu1 %1059 }
 0x47c   : > { %v1066_v9 = vadd.f32 %v1060_v7, %v1050_v6 }
 0x47e   : > { %1071 = vst.msk [vmem:[#allocation6 + $0x10] sm:$0xff] %vm1068_vm2, %v1066_v9 }
 0x47f   : > { %v1054_v12 = vpop.xlane.xlu1 %1053 }
 0x480   : > { %v1064_v13 = vadd.f32 %v1054_v12, %v1048_v11 }
 0x481   : > { %v1057_v15 = vpop.xlane.xlu0 %1056 }
 0x482   : > { %1069 = vst.msk [vmem:[#allocation6] sm:$0xff] %vm1068_vm2, %v1064_v13  ;;  %v1065_v17 = vadd.f32 %v1057_v15, %v1049_v14 }
 0x484   : > { %1070 = vst.msk [vmem:[#allocation6 + $0x8] sm:$0xff] %vm1068_vm2, %v1065_v17 }
 0x485   : > { %v1063_v19 = vpop.xlane.xlu1 %1062 }
 0x486   : > { %v1067_v20 = vadd.f32 %v1063_v19, %v1051_v18 }
 0x488   : > { %1072 = vst.msk [vmem:[#allocation6 + $0x18] sm:$0xff] %vm1068_vm2, %v1067_v20 }
 0x489   : > { %v1090_v21 = vpop.permute.xlu1 %1089  ;;  %v1085_v31 = vpop.permute.xlu0 %1084 }
 0x48a   : > { %v1099_v24 = vmul.f32 %v1090_v21, %v1075_v22  ;;  %v1098_v36 = vmul.f32 %v1085_v31, %v1074_v30 }
 0x48d   : > { %v1095_v26 = vpop.permute.xlu1 %1094 }
 0x48e   : > { %v1100_v33 = vmul.f32 %v1095_v26, %v1076_v25 }
 0x4bd   : > { %v1595_v27 = vpop.f32.mrf.mxu1 }
 0x4be   : > { %v1172_v29 = vadd.f32 %v1595_v27, %v1099_v24 }
 0x4bf   : > { %v1155_v32 = vpop.f32.mrf.mxu1 }
 0x4c0   : > { %1176 = vst [vmem:[#allocation7 + $0x18] sm:$0xff] %v1172_v29  ;;  %v1170_v34 = vadd.f32 %v1155_v32, %v1097_v28 }
 0x4c1   : > { %v1596_v35 = vpop.f32.mrf.mxu1 }
 0x4c2   : > { %1174 = vst [vmem:[#allocation7 + $0x10] sm:$0xff] %v1170_v34  ;;  %v1173_v37 = vadd.f32 %v1596_v35, %v1100_v33  ;;  %1185 = sbr.rel (%p1431_p12) target bundleno = 1374 (0x55e), region = 68 }
 0x4c3   : > { %v1158_v38 = vpop.f32.mrf.mxu1 }
 0x4c4   : > { %1177 = vst [vmem:[#allocation7 + $0x8] sm:$0xff] %v1173_v37  ;;  %v1171_v39 = vadd.f32 %v1158_v38, %v1098_v36 }
 0x4c6   : > { %1175 = vst [vmem:[#allocation7] sm:$0xff] %v1171_v39 }
 0x4c7   : > { %v1188_v40 = vld [vmem:[#allocation6 + $0x10] sm:$0xff]  ;;  %v1186_v41 = vld [vmem:[#allocation6] sm:$0xff]  ;;  %v1189_v42 = vld [vmem:[#allocation6 + $0x18] sm:$0xff]  ;;  %v1774_v43 = vmov 0   ;;  %v1223_v51 = vstv %s1194_s11 }
 0x4c8   : > { %1706 = vset.pattern.permute.xlu1 %v1774_v43  ;;  %1705 = vset.pattern.permute.xlu0 %v1774_v43  ;;  %1707 = vrcp.f32 %v1188_v40  ;;  %v1187_v44 = vld [vmem:[#allocation6 + $0x8] sm:$0xff]  ;;  %v1197_v49 = vld [vmem:[#allocation7 + $0x18] sm:$0xff]  ;;  %v1230_v55 = vld [vmem:[%s1879_s26 + $0x10] sm:$0xff] }
 0x4c9   : > { %1709 = vrcp.f32 %v1186_v41  ;;  %v1195_v50 = vld [vmem:[#allocation7 + $0x10] sm:$0xff]  ;;  %v1231_v3 = vld [vmem:[%s1879_s26 + $0x18] sm:$0xff]  ;;  %v1229_v6 = vld [vmem:[%s1879_s26 + $0x8] sm:$0xff] }
 0x4ca   : > { %1711 = vrcp.f32 %v1189_v42  ;;  %v1228_v59 = vld [vmem:[%s1879_s26] sm:$0xff] }
 0x4cb   : > { %1713 = vrcp.f32 %v1187_v44  ;;  %v1198_v57 = vld [vmem:[#allocation7 + $0x8] sm:$0xff] }
 0x4cd   : > { %v1196_v60 = vld [vmem:[#allocation7] sm:$0xff] }
 0x4d5   : > { %v1708_v45 = vpop.eup %1707 }
 0x4d6   : > { %v1710_v46 = vpop.eup %1709  ;;  %1211 = vperm.xlu1 %1706, %v1708_v45  }
 0x4d7   : > { %v1712_v47 = vpop.eup %1711  ;;  %1201 = vperm.xlu0 %1705, %v1710_v46  }
 0x4d8   : > { %v1714_v48 = vpop.eup %1713 }
 0x4da   : > { %1216 = vperm.xlu1 %1706, %v1712_v47  }
 0x4db   : > { %1206 = vperm.xlu0 %1705, %v1714_v48  }
 0x551   : > { %v1212_v52 = vpop.permute.xlu1 %1211 }
 0x552   : > { %v1221_v53 = vmul.f32 %v1212_v52, %v1197_v49  ;;  %v1202_v54 = vpop.permute.xlu0 %1201 }
 0x553   : > { %v1219_v56 = vmul.f32 %v1202_v54, %v1195_v50 }
 0x554   : > { %v1226_v58 = vmul.f32 %v1223_v51, %v1221_v53 }
 0x555   : > { %v1224_v61 = vmul.f32 %v1223_v51, %v1219_v56  ;;  %v1217_v62 = vpop.permute.xlu1 %1216 }
 0x556   : > { %v1234_v63 = vadd.f32 %v1230_v55, %v1226_v58  ;;  %v1222_v0 = vmul.f32 %v1217_v62, %v1198_v57  ;;  %v1207_v1 = vpop.permute.xlu0 %1206 }
 0x557   : > { %v1232_v2 = vadd.f32 %v1228_v59, %v1224_v61  ;;  %v1220_v4 = vmul.f32 %v1207_v1, %v1196_v60 }
 0x558   : > { %1238 = vst [vmem:[%s1884_s29 + $0x10] sm:$0xff] %v1234_v63  ;;  %v1227_v5 = vmul.f32 %v1223_v51, %v1222_v0 }
 0x559   : > { %1236 = vst [vmem:[%s1884_s29] sm:$0xff] %v1232_v2  ;;  %v1225_v7 = vmul.f32 %v1223_v51, %v1220_v4 }
 0x55a   : > { %v1235_v8 = vadd.f32 %v1231_v3, %v1227_v5 }
 0x55b   : > { %v1233_v9 = vadd.f32 %v1229_v6, %v1225_v7 }
 0x55c   : > { %1239 = vst [vmem:[%s1884_s29 + $0x18] sm:$0xff] %v1235_v8 }
 0x55d   : > { %1237 = vst [vmem:[%s1884_s29 + $0x8] sm:$0xff] %v1233_v9 }
 0x55e PF: > { %s20_s17 = sadd.s32 1, %s1769_s17   ;;  %s2058_s23 = sld [smem:[#allocation9_spill]] }
 0x55f   : > { %p17_p13 = scmp.ge.s32.totalorder %s20_s17, 10   ;;  %s2059_s25 = sld [smem:[#allocation10_spill]] }
 0x560   : > { %s2060_s27 = sld [smem:[#allocation11_spill]]  ;;  %s2061_s11 = smov %s1757_s14 }
 0x561   : > { %s2062_s12 = smov %s1761_s15  ;;  %s2063_s13 = smov %s1765_s16 }
 0x562   :  { %19 = sbr.rel (!%p17_p13) target bundleno = 4 (0x4), region = 105 }
 0x564   : > { %s2064_s14 = smov %s2058_s23 }
 0x565   : > { %s2065_s15 = smov %s2059_s25 }
 0x566   : > { %s2066_s16 = smov %s2060_s27 }

</bundles_post_ra>
